<compile_context>
chip_gen: v7x
topology: tpu7x:2x2x1
jax: 0.10.0
libtpu: 0.0.40
codegen_flags: <defaults>
</compile_context>

<pallas_src>
import functools

import jax
import jax.numpy as jnp
from jax.experimental import pallas as pl
from jax.experimental.pallas import tpu as pltpu


def _encoder_layer_kernel(
    x_ref,
    wqkv_ref, bqkv_ref, wo_ref, bo_ref,
    g1_ref, be1_ref,
    w1_ref, b1_ref, w2_ref, b2_ref,
    g2_ref, be2_ref,
    o_ref,
    *, head_num, eps):
    # x_ref: (S, D) block for one batch element (batch dim squeezed by BlockSpec)
    x = x_ref[...]                                   # (S, D) f32
    S, D = x.shape
    dh = D // head_num
    inv_temp = 1.0 / (float(head_num * dh) ** 0.5)   # temperature = sqrt(H*dh)

    # ---- fused Q/K/V projection: one (S,D)x(D,3D) MXU matmul ----------------
    qkv = (jnp.dot(x, wqkv_ref[...], preferred_element_type=jnp.float32)
           + bqkv_ref[...])                          # (S, 3D)

    # ---- scaled dot-product attention, statically unrolled over heads -------
    ctx_parts = []
    for h in range(head_num):
        lo = h * dh
        qh = qkv[:, lo:lo + dh]                      # (S, dh)
        kh = qkv[:, D + lo:D + lo + dh]
        vh = qkv[:, 2 * D + lo:2 * D + lo + dh]
        # q @ k^T without an explicit transpose (MXU trans_b path)
        s = jax.lax.dot_general(
            qh, kh, (((1,), (1,)), ((), ())),
            preferred_element_type=jnp.float32) * inv_temp        # (S, S)
        m = jnp.max(s, axis=-1, keepdims=True)
        e = jnp.exp(s - m)
        a = e / jnp.sum(e, axis=-1, keepdims=True)                # softmax
        ctx_parts.append(
            jnp.dot(a, vh, preferred_element_type=jnp.float32))   # (S, dh)
    ctx = jnp.concatenate(ctx_parts, axis=-1)                     # (S, D)

    # ---- output projection + residual + LayerNorm 1 --------------------------
    att = jnp.dot(ctx, wo_ref[...], preferred_element_type=jnp.float32) + bo_ref[...]
    y = att + x
    mu = jnp.mean(y, axis=-1, keepdims=True)
    var = jnp.mean((y - mu) ** 2, axis=-1, keepdims=True)
    out1 = (y - mu) * jax.lax.rsqrt(var + eps) * g1_ref[...] + be1_ref[...]

    # ---- Feedforward: Linear -> ReLU -> Linear -> ReLU (dropout = identity) --
    h1 = jnp.dot(out1, w1_ref[...], preferred_element_type=jnp.float32) + b1_ref[...]
    h1 = jnp.maximum(h1, 0.0)                                     # (S, F)
    h2 = jnp.dot(h1, w2_ref[...], preferred_element_type=jnp.float32) + b2_ref[...]
    h2 = jnp.maximum(h2, 0.0)                                     # (S, D)

    # ---- residual + LayerNorm 2 ----------------------------------------------
    z = h2 + out1
    mu2 = jnp.mean(z, axis=-1, keepdims=True)
    var2 = jnp.mean((z - mu2) ** 2, axis=-1, keepdims=True)
    o_ref[...] = ((z - mu2) * jax.lax.rsqrt(var2 + eps)
                  * g2_ref[...] + be2_ref[...]).astype(o_ref.dtype)


@functools.partial(jax.jit, static_argnames=("head_num",))
def transformer_encoder_layer(x, params, head_num):
    """x: (B, S, D) f32.  params: PyTorch-convention weights/biases (see main)."""
    (wq, bq, wk, bk, wv, bv, wo, bo,
     g1, be1, w1, b1, w2, b2, g2, be2) = params
    B, S, D = x.shape
    f32 = jnp.float32

    # Glue: transpose Linear weights from PyTorch (out, in) to (in, out) so the
    # kernel computes x @ W + b; fuse Q/K/V into one (D, 3D) weight; lift 1-D
    # vectors to lane-major (1, n).
    wqkv = jnp.concatenate([wq.T, wk.T, wv.T], axis=1).astype(f32)     # (D, 3D)
    bqkv = jnp.concatenate([bq, bk, bv]).reshape(1, -1).astype(f32)    # (1, 3D)

    args = (
        wqkv, bqkv,
        wo.T.astype(f32), bo.reshape(1, -1).astype(f32),
        g1.reshape(1, -1).astype(f32), be1.reshape(1, -1).astype(f32),
        w1.T.astype(f32), b1.reshape(1, -1).astype(f32),
        w2.T.astype(f32), b2.reshape(1, -1).astype(f32),
        g2.reshape(1, -1).astype(f32), be2.reshape(1, -1).astype(f32),
    )

    def _resident(a):
        # Whole-array block, constant index_map -> fetched once, reused per step.
        nd = a.ndim
        return pl.BlockSpec(a.shape, lambda b, _nd=nd: (0,) * _nd)

    kernel = functools.partial(_encoder_layer_kernel, head_num=head_num, eps=1e-5)

    out = pl.pallas_call(
        kernel,
        out_shape=jax.ShapeDtypeStruct((B, S, D), jnp.float32),
        grid=(B,),
        in_specs=[pl.BlockSpec((None, S, D), lambda b: (b, 0, 0))]
                 + [_resident(a) for a in args],
        out_specs=pl.BlockSpec((None, S, D), lambda b: (b, 0, 0)),
        compiler_params=pltpu.CompilerParams(
            dimension_semantics=("parallel",)),
    )(x.astype(f32), *args)
    return out


def _reference(x, params, head_num, eps=1e-5):
    """Pure-JAX reference matching the PyTorch forward (eval mode, no dropout)."""
    (wq, bq, wk, bk, wv, bv, wo, bo,
     g1, be1, w1, b1, w2, b2, g2, be2) = params
    B, S, D = x.shape
    dh = D // head_num
    P = jax.lax.Precision.HIGHEST

    def lin(t, w, b):
        return jnp.matmul(t, w.T, precision=P) + b

    q = lin(x, wq, bq).reshape(B, S, head_num, dh).transpose(0, 2, 1, 3)
    k = lin(x, wk, bk).reshape(B, S, head_num, dh).transpose(0, 2, 1, 3)
    v = lin(x, wv, bv).reshape(B, S, head_num, dh).transpose(0, 2, 1, 3)
    attn = jnp.einsum("bhqd,bhkd->bhqk", q, k, precision=P)
    attn = attn / (float(head_num * dh) ** 0.5)
    attn = jax.nn.softmax(attn, axis=-1)
    ctx = jnp.einsum("bhqk,bhkd->bhqd", attn, v, precision=P)
    ctx = ctx.transpose(0, 2, 1, 3).reshape(B, S, D)
    att = lin(ctx, wo, bo)

    def ln(y, g, b):
        mu = jnp.mean(y, axis=-1, keepdims=True)
        var = jnp.mean((y - mu) ** 2, axis=-1, keepdims=True)
        return (y - mu) / jnp.sqrt(var + eps) * g + b

    out1 = ln(att + x, g1, be1)
    ff = jnp.maximum(lin(out1, w1, b1), 0.0)
    ff = jnp.maximum(lin(ff, w2, b2), 0.0)
    return ln(ff + out1, g2, be2)


if __name__ == "__main__":
    B, S, D, F, H = 2, 8, 32, 64, 4   # batch, seq, input_size, filter_size, head_num

    key = jax.random.PRNGKey(0)
    ks = jax.random.split(key, 20)
    sD = 1.0 / (D ** 0.5)
    sF = 1.0 / (F ** 0.5)

    x = jax.random.normal(ks[0], (B, S, D), dtype=jnp.float32)
    wq = jax.random.normal(ks[1], (D, D), dtype=jnp.float32) * sD
    bq = jax.random.normal(ks[2], (D,), dtype=jnp.float32) * 0.02
    wk = jax.random.normal(ks[3], (D, D), dtype=jnp.float32) * sD
    bk = jax.random.normal(ks[4], (D,), dtype=jnp.float32) * 0.02
    wv = jax.random.normal(ks[5], (D, D), dtype=jnp.float32) * sD
    bv = jax.random.normal(ks[6], (D,), dtype=jnp.float32) * 0.02
    wo = jax.random.normal(ks[7], (D, D), dtype=jnp.float32) * sD
    bo = jax.random.normal(ks[8], (D,), dtype=jnp.float32) * 0.02
    g1 = 1.0 + 0.05 * jax.random.normal(ks[9], (D,), dtype=jnp.float32)
    be1 = 0.02 * jax.random.normal(ks[10], (D,), dtype=jnp.float32)
    w1 = jax.random.normal(ks[11], (F, D), dtype=jnp.float32) * sD
    b1 = jax.random.normal(ks[12], (F,), dtype=jnp.float32) * 0.02
    w2 = jax.random.normal(ks[13], (D, F), dtype=jnp.float32) * sF
    b2 = jax.random.normal(ks[14], (D,), dtype=jnp.float32) * 0.02
    g2 = 1.0 + 0.05 * jax.random.normal(ks[15], (D,), dtype=jnp.float32)
    be2 = 0.02 * jax.random.normal(ks[16], (D,), dtype=jnp.float32)

    params = (wq, bq, wk, bk, wv, bv, wo, bo,
              g1, be1, w1, b1, w2, b2, g2, be2)

    out = transformer_encoder_layer(x, params, head_num=H)
    out = jax.block_until_ready(out)

    ref = _reference(x, params, H)
    assert out.shape == (B, S, D), out.shape
    max_err = float(jnp.max(jnp.abs(out - ref)))
    assert jnp.allclose(out, ref, rtol=1e-3, atol=1e-3), max_err
    print("KERNEL_OK")
</pallas_src>

<mosaic_0001>
module attributes {stable_mosaic.version = 11 : i64} {
  func.func @_encoder_layer_kernel(%arg0: i32, %arg1: memref<1x8x32xf32, #tpu.memory_space<vmem>>, %arg2: memref<32x96xf32, #tpu.memory_space<vmem>>, %arg3: memref<1x96xf32, #tpu.memory_space<vmem>>, %arg4: memref<32x32xf32, #tpu.memory_space<vmem>>, %arg5: memref<1x32xf32, #tpu.memory_space<vmem>>, %arg6: memref<1x32xf32, #tpu.memory_space<vmem>>, %arg7: memref<1x32xf32, #tpu.memory_space<vmem>>, %arg8: memref<32x64xf32, #tpu.memory_space<vmem>>, %arg9: memref<1x64xf32, #tpu.memory_space<vmem>>, %arg10: memref<64x32xf32, #tpu.memory_space<vmem>>, %arg11: memref<1x32xf32, #tpu.memory_space<vmem>>, %arg12: memref<1x32xf32, #tpu.memory_space<vmem>>, %arg13: memref<1x32xf32, #tpu.memory_space<vmem>>, %arg14: memref<1x8x32xf32, #tpu.memory_space<vmem>>) attributes {dimension_semantics = [#tpu.dimension_semantics<parallel>], iteration_bounds = array<i64: 2>, scalar_prefetch = 0 : i64, scratch_operands = 0 : i64, tpu.core_type = #tpu.core_type<tc>, window_params = [{transform_indices = @transform_0, window_bounds = array<i64: 1, 8, 32>}, {pipeline_mode = #tpu.pipeline_mode<synchronous>, transform_indices = @transform_1, window_bounds = array<i64: 32, 96>}, {pipeline_mode = #tpu.pipeline_mode<synchronous>, transform_indices = @transform_2, window_bounds = array<i64: 1, 96>}, {pipeline_mode = #tpu.pipeline_mode<synchronous>, transform_indices = @transform_3, window_bounds = array<i64: 32, 32>}, {pipeline_mode = #tpu.pipeline_mode<synchronous>, transform_indices = @transform_4, window_bounds = array<i64: 1, 32>}, {pipeline_mode = #tpu.pipeline_mode<synchronous>, transform_indices = @transform_5, window_bounds = array<i64: 1, 32>}, {pipeline_mode = #tpu.pipeline_mode<synchronous>, transform_indices = @transform_6, window_bounds = array<i64: 1, 32>}, {pipeline_mode = #tpu.pipeline_mode<synchronous>, transform_indices = @transform_7, window_bounds = array<i64: 32, 64>}, {pipeline_mode = #tpu.pipeline_mode<synchronous>, transform_indices = @transform_8, window_bounds = array<i64: 1, 64>}, {pipeline_mode = #tpu.pipeline_mode<synchronous>, transform_indices = @transform_9, window_bounds = array<i64: 64, 32>}, {pipeline_mode = #tpu.pipeline_mode<synchronous>, transform_indices = @transform_10, window_bounds = array<i64: 1, 32>}, {pipeline_mode = #tpu.pipeline_mode<synchronous>, transform_indices = @transform_11, window_bounds = array<i64: 1, 32>}, {pipeline_mode = #tpu.pipeline_mode<synchronous>, transform_indices = @transform_12, window_bounds = array<i64: 1, 32>}, {transform_indices = @transform_13, window_bounds = array<i64: 1, 8, 32>}]} {
    %c0 = arith.constant 0 : index
    %c0_0 = arith.constant 0 : index
    %c0_1 = arith.constant 0 : index
    %0 = vector.load %arg1[%c0, %c0_0, %c0_1] : memref<1x8x32xf32, #tpu.memory_space<vmem>>, vector<1x8x32xf32>
    %1 = vector.shape_cast %0 : vector<1x8x32xf32> to vector<8x32xf32>
    %c0_2 = arith.constant 0 : index
    %c0_3 = arith.constant 0 : index
    %2 = vector.load %arg2[%c0_2, %c0_3] : memref<32x96xf32, #tpu.memory_space<vmem>>, vector<32x96xf32>
    %cst = arith.constant dense<0.000000e+00> : vector<8x96xf32>
    %3 = tpu.matmul %1, %2, %cst {dimension_numbers = #tpu.dot_dimension_numbers<[1], [0], [0], [1], [0, 0, 1, 1], [], []>} : vector<8x32xf32>, vector<32x96xf32>, vector<8x96xf32> -> vector<8x96xf32>
    %c0_4 = arith.constant 0 : index
    %c0_5 = arith.constant 0 : index
    %4 = vector.load %arg3[%c0_4, %c0_5] : memref<1x96xf32, #tpu.memory_space<vmem>>, vector<1x96xf32>
    %5 = vector.broadcast %4 : vector<1x96xf32> to vector<8x96xf32>
    %6 = arith.addf %3, %5 : vector<8x96xf32>
    %7 = vector.extract_strided_slice %6 {offsets = [0, 0], sizes = [8, 8], strides = [1, 1]} : vector<8x96xf32> to vector<8x8xf32>
    %8 = vector.extract_strided_slice %6 {offsets = [0, 32], sizes = [8, 8], strides = [1, 1]} : vector<8x96xf32> to vector<8x8xf32>
    %9 = vector.extract_strided_slice %6 {offsets = [0, 64], sizes = [8, 8], strides = [1, 1]} : vector<8x96xf32> to vector<8x8xf32>
    %cst_6 = arith.constant dense<0.000000e+00> : vector<8x8xf32>
    %10 = tpu.matmul %7, %8, %cst_6 {dimension_numbers = #tpu.dot_dimension_numbers<[1], [1], [0], [0], [0, 0, 1, 0], [], []>} : vector<8x8xf32>, vector<8x8xf32>, vector<8x8xf32> -> vector<8x8xf32>
    %cst_7 = arith.constant 0.176776692 : f32
    %11 = vector.broadcast %cst_7 : f32 to vector<8x8xf32>
    %12 = arith.mulf %10, %11 : vector<8x8xf32>
    %cst_8 = arith.constant dense<0xFF800000> : vector<8xf32>
    %13 = vector.multi_reduction <maximumf>, %12, %cst_8 [1] : vector<8x8xf32> to vector<8xf32>
    %14 = vector.shape_cast %13 : vector<8xf32> to vector<8x1xf32>
    %15 = vector.broadcast %14 : vector<8x1xf32> to vector<8x8xf32>
    %16 = arith.subf %12, %15 : vector<8x8xf32>
    %17 = math.exp %16 : vector<8x8xf32>
    %cst_9 = arith.constant dense<0.000000e+00> : vector<8xf32>
    %18 = vector.multi_reduction <add>, %17, %cst_9 [1] : vector<8x8xf32> to vector<8xf32>
    %19 = vector.shape_cast %18 : vector<8xf32> to vector<8x1xf32>
    %20 = vector.broadcast %19 : vector<8x1xf32> to vector<8x8xf32>
    %21 = arith.divf %17, %20 : vector<8x8xf32>
    %cst_10 = arith.constant dense<0.000000e+00> : vector<8x8xf32>
    %22 = tpu.matmul %21, %9, %cst_10 {dimension_numbers = #tpu.dot_dimension_numbers<[1], [0], [0], [1], [0, 0, 1, 1], [], []>} : vector<8x8xf32>, vector<8x8xf32>, vector<8x8xf32> -> vector<8x8xf32>
    %23 = vector.extract_strided_slice %6 {offsets = [0, 8], sizes = [8, 8], strides = [1, 1]} : vector<8x96xf32> to vector<8x8xf32>
    %24 = vector.extract_strided_slice %6 {offsets = [0, 40], sizes = [8, 8], strides = [1, 1]} : vector<8x96xf32> to vector<8x8xf32>
    %25 = vector.extract_strided_slice %6 {offsets = [0, 72], sizes = [8, 8], strides = [1, 1]} : vector<8x96xf32> to vector<8x8xf32>
    %cst_11 = arith.constant dense<0.000000e+00> : vector<8x8xf32>
    %26 = tpu.matmul %23, %24, %cst_11 {dimension_numbers = #tpu.dot_dimension_numbers<[1], [1], [0], [0], [0, 0, 1, 0], [], []>} : vector<8x8xf32>, vector<8x8xf32>, vector<8x8xf32> -> vector<8x8xf32>
    %cst_12 = arith.constant 0.176776692 : f32
    %27 = vector.broadcast %cst_12 : f32 to vector<8x8xf32>
    %28 = arith.mulf %26, %27 : vector<8x8xf32>
    %cst_13 = arith.constant dense<0xFF800000> : vector<8xf32>
    %29 = vector.multi_reduction <maximumf>, %28, %cst_13 [1] : vector<8x8xf32> to vector<8xf32>
    %30 = vector.shape_cast %29 : vector<8xf32> to vector<8x1xf32>
    %31 = vector.broadcast %30 : vector<8x1xf32> to vector<8x8xf32>
    %32 = arith.subf %28, %31 : vector<8x8xf32>
    %33 = math.exp %32 : vector<8x8xf32>
    %cst_14 = arith.constant dense<0.000000e+00> : vector<8xf32>
    %34 = vector.multi_reduction <add>, %33, %cst_14 [1] : vector<8x8xf32> to vector<8xf32>
    %35 = vector.shape_cast %34 : vector<8xf32> to vector<8x1xf32>
    %36 = vector.broadcast %35 : vector<8x1xf32> to vector<8x8xf32>
    %37 = arith.divf %33, %36 : vector<8x8xf32>
    %cst_15 = arith.constant dense<0.000000e+00> : vector<8x8xf32>
    %38 = tpu.matmul %37, %25, %cst_15 {dimension_numbers = #tpu.dot_dimension_numbers<[1], [0], [0], [1], [0, 0, 1, 1], [], []>} : vector<8x8xf32>, vector<8x8xf32>, vector<8x8xf32> -> vector<8x8xf32>
    %39 = vector.extract_strided_slice %6 {offsets = [0, 16], sizes = [8, 8], strides = [1, 1]} : vector<8x96xf32> to vector<8x8xf32>
    %40 = vector.extract_strided_slice %6 {offsets = [0, 48], sizes = [8, 8], strides = [1, 1]} : vector<8x96xf32> to vector<8x8xf32>
    %41 = vector.extract_strided_slice %6 {offsets = [0, 80], sizes = [8, 8], strides = [1, 1]} : vector<8x96xf32> to vector<8x8xf32>
    %cst_16 = arith.constant dense<0.000000e+00> : vector<8x8xf32>
    %42 = tpu.matmul %39, %40, %cst_16 {dimension_numbers = #tpu.dot_dimension_numbers<[1], [1], [0], [0], [0, 0, 1, 0], [], []>} : vector<8x8xf32>, vector<8x8xf32>, vector<8x8xf32> -> vector<8x8xf32>
    %cst_17 = arith.constant 0.176776692 : f32
    %43 = vector.broadcast %cst_17 : f32 to vector<8x8xf32>
    %44 = arith.mulf %42, %43 : vector<8x8xf32>
    %cst_18 = arith.constant dense<0xFF800000> : vector<8xf32>
    %45 = vector.multi_reduction <maximumf>, %44, %cst_18 [1] : vector<8x8xf32> to vector<8xf32>
    %46 = vector.shape_cast %45 : vector<8xf32> to vector<8x1xf32>
    %47 = vector.broadcast %46 : vector<8x1xf32> to vector<8x8xf32>
    %48 = arith.subf %44, %47 : vector<8x8xf32>
    %49 = math.exp %48 : vector<8x8xf32>
    %cst_19 = arith.constant dense<0.000000e+00> : vector<8xf32>
    %50 = vector.multi_reduction <add>, %49, %cst_19 [1] : vector<8x8xf32> to vector<8xf32>
    %51 = vector.shape_cast %50 : vector<8xf32> to vector<8x1xf32>
    %52 = vector.broadcast %51 : vector<8x1xf32> to vector<8x8xf32>
    %53 = arith.divf %49, %52 : vector<8x8xf32>
    %cst_20 = arith.constant dense<0.000000e+00> : vector<8x8xf32>
    %54 = tpu.matmul %53, %41, %cst_20 {dimension_numbers = #tpu.dot_dimension_numbers<[1], [0], [0], [1], [0, 0, 1, 1], [], []>} : vector<8x8xf32>, vector<8x8xf32>, vector<8x8xf32> -> vector<8x8xf32>
    %55 = vector.extract_strided_slice %6 {offsets = [0, 24], sizes = [8, 8], strides = [1, 1]} : vector<8x96xf32> to vector<8x8xf32>
    %56 = vector.extract_strided_slice %6 {offsets = [0, 56], sizes = [8, 8], strides = [1, 1]} : vector<8x96xf32> to vector<8x8xf32>
    %57 = vector.extract_strided_slice %6 {offsets = [0, 88], sizes = [8, 8], strides = [1, 1]} : vector<8x96xf32> to vector<8x8xf32>
    %cst_21 = arith.constant dense<0.000000e+00> : vector<8x8xf32>
    %58 = tpu.matmul %55, %56, %cst_21 {dimension_numbers = #tpu.dot_dimension_numbers<[1], [1], [0], [0], [0, 0, 1, 0], [], []>} : vector<8x8xf32>, vector<8x8xf32>, vector<8x8xf32> -> vector<8x8xf32>
    %cst_22 = arith.constant 0.176776692 : f32
    %59 = vector.broadcast %cst_22 : f32 to vector<8x8xf32>
    %60 = arith.mulf %58, %59 : vector<8x8xf32>
    %cst_23 = arith.constant dense<0xFF800000> : vector<8xf32>
    %61 = vector.multi_reduction <maximumf>, %60, %cst_23 [1] : vector<8x8xf32> to vector<8xf32>
    %62 = vector.shape_cast %61 : vector<8xf32> to vector<8x1xf32>
    %63 = vector.broadcast %62 : vector<8x1xf32> to vector<8x8xf32>
    %64 = arith.subf %60, %63 : vector<8x8xf32>
    %65 = math.exp %64 : vector<8x8xf32>
    %cst_24 = arith.constant dense<0.000000e+00> : vector<8xf32>
    %66 = vector.multi_reduction <add>, %65, %cst_24 [1] : vector<8x8xf32> to vector<8xf32>
    %67 = vector.shape_cast %66 : vector<8xf32> to vector<8x1xf32>
    %68 = vector.broadcast %67 : vector<8x1xf32> to vector<8x8xf32>
    %69 = arith.divf %65, %68 : vector<8x8xf32>
    %cst_25 = arith.constant dense<0.000000e+00> : vector<8x8xf32>
    %70 = tpu.matmul %69, %57, %cst_25 {dimension_numbers = #tpu.dot_dimension_numbers<[1], [0], [0], [1], [0, 0, 1, 1], [], []>} : vector<8x8xf32>, vector<8x8xf32>, vector<8x8xf32> -> vector<8x8xf32>
    %71 = tpu.concatenate %22, %38, %54, %70 in 1 : vector<8x8xf32>, vector<8x8xf32>, vector<8x8xf32>, vector<8x8xf32> -> vector<8x32xf32>
    %c0_26 = arith.constant 0 : index
    %c0_27 = arith.constant 0 : index
    %72 = vector.load %arg4[%c0_26, %c0_27] : memref<32x32xf32, #tpu.memory_space<vmem>>, vector<32x32xf32>
    %cst_28 = arith.constant dense<0.000000e+00> : vector<8x32xf32>
    %73 = tpu.matmul %71, %72, %cst_28 {dimension_numbers = #tpu.dot_dimension_numbers<[1], [0], [0], [1], [0, 0, 1, 1], [], []>} : vector<8x32xf32>, vector<32x32xf32>, vector<8x32xf32> -> vector<8x32xf32>
    %c0_29 = arith.constant 0 : index
    %c0_30 = arith.constant 0 : index
    %74 = vector.load %arg5[%c0_29, %c0_30] : memref<1x32xf32, #tpu.memory_space<vmem>>, vector<1x32xf32>
    %75 = vector.broadcast %74 : vector<1x32xf32> to vector<8x32xf32>
    %76 = arith.addf %73, %75 : vector<8x32xf32>
    %77 = arith.addf %76, %1 : vector<8x32xf32>
    %cst_31 = arith.constant dense<0.000000e+00> : vector<8xf32>
    %78 = vector.multi_reduction <add>, %77, %cst_31 [1] : vector<8x32xf32> to vector<8xf32>
    %79 = vector.shape_cast %78 : vector<8xf32> to vector<8x1xf32>
    %cst_32 = arith.constant 3.200000e+01 : f32
    %80 = vector.broadcast %cst_32 : f32 to vector<8x1xf32>
    %81 = arith.divf %79, %80 : vector<8x1xf32>
    %82 = vector.broadcast %81 : vector<8x1xf32> to vector<8x32xf32>
    %83 = arith.subf %77, %82 : vector<8x32xf32>
    %84 = arith.mulf %83, %83 : vector<8x32xf32>
    %cst_33 = arith.constant dense<0.000000e+00> : vector<8xf32>
    %85 = vector.multi_reduction <add>, %84, %cst_33 [1] : vector<8x32xf32> to vector<8xf32>
    %86 = vector.shape_cast %85 : vector<8xf32> to vector<8x1xf32>
    %cst_34 = arith.constant 3.200000e+01 : f32
    %87 = vector.broadcast %cst_34 : f32 to vector<8x1xf32>
    %88 = arith.divf %86, %87 : vector<8x1xf32>
    %89 = vector.broadcast %81 : vector<8x1xf32> to vector<8x32xf32>
    %90 = arith.subf %77, %89 : vector<8x32xf32>
    %cst_35 = arith.constant 9.99999974E-6 : f32
    %91 = vector.broadcast %cst_35 : f32 to vector<8x1xf32>
    %92 = arith.addf %88, %91 : vector<8x1xf32>
    %93 = math.rsqrt %92 : vector<8x1xf32>
    %94 = vector.broadcast %93 : vector<8x1xf32> to vector<8x32xf32>
    %95 = arith.mulf %90, %94 : vector<8x32xf32>
    %c0_36 = arith.constant 0 : index
    %c0_37 = arith.constant 0 : index
    %96 = vector.load %arg6[%c0_36, %c0_37] : memref<1x32xf32, #tpu.memory_space<vmem>>, vector<1x32xf32>
    %97 = vector.broadcast %96 : vector<1x32xf32> to vector<8x32xf32>
    %98 = arith.mulf %95, %97 : vector<8x32xf32>
    %c0_38 = arith.constant 0 : index
    %c0_39 = arith.constant 0 : index
    %99 = vector.load %arg7[%c0_38, %c0_39] : memref<1x32xf32, #tpu.memory_space<vmem>>, vector<1x32xf32>
    %100 = vector.broadcast %99 : vector<1x32xf32> to vector<8x32xf32>
    %101 = arith.addf %98, %100 : vector<8x32xf32>
    %c0_40 = arith.constant 0 : index
    %c0_41 = arith.constant 0 : index
    %102 = vector.load %arg8[%c0_40, %c0_41] : memref<32x64xf32, #tpu.memory_space<vmem>>, vector<32x64xf32>
    %cst_42 = arith.constant dense<0.000000e+00> : vector<8x64xf32>
    %103 = tpu.matmul %101, %102, %cst_42 {dimension_numbers = #tpu.dot_dimension_numbers<[1], [0], [0], [1], [0, 0, 1, 1], [], []>} : vector<8x32xf32>, vector<32x64xf32>, vector<8x64xf32> -> vector<8x64xf32>
    %c0_43 = arith.constant 0 : index
    %c0_44 = arith.constant 0 : index
    %104 = vector.load %arg9[%c0_43, %c0_44] : memref<1x64xf32, #tpu.memory_space<vmem>>, vector<1x64xf32>
    %105 = vector.broadcast %104 : vector<1x64xf32> to vector<8x64xf32>
    %106 = arith.addf %103, %105 : vector<8x64xf32>
    %cst_45 = arith.constant 0.000000e+00 : f32
    %107 = vector.broadcast %cst_45 : f32 to vector<8x64xf32>
    %108 = arith.maximumf %106, %107 : vector<8x64xf32>
    %c0_46 = arith.constant 0 : index
    %c0_47 = arith.constant 0 : index
    %109 = vector.load %arg10[%c0_46, %c0_47] : memref<64x32xf32, #tpu.memory_space<vmem>>, vector<64x32xf32>
    %cst_48 = arith.constant dense<0.000000e+00> : vector<8x32xf32>
    %110 = tpu.matmul %108, %109, %cst_48 {dimension_numbers = #tpu.dot_dimension_numbers<[1], [0], [0], [1], [0, 0, 1, 1], [], []>} : vector<8x64xf32>, vector<64x32xf32>, vector<8x32xf32> -> vector<8x32xf32>
    %c0_49 = arith.constant 0 : index
    %c0_50 = arith.constant 0 : index
    %111 = vector.load %arg11[%c0_49, %c0_50] : memref<1x32xf32, #tpu.memory_space<vmem>>, vector<1x32xf32>
    %112 = vector.broadcast %111 : vector<1x32xf32> to vector<8x32xf32>
    %113 = arith.addf %110, %112 : vector<8x32xf32>
    %cst_51 = arith.constant 0.000000e+00 : f32
    %114 = vector.broadcast %cst_51 : f32 to vector<8x32xf32>
    %115 = arith.maximumf %113, %114 : vector<8x32xf32>
    %116 = arith.addf %115, %101 : vector<8x32xf32>
    %cst_52 = arith.constant dense<0.000000e+00> : vector<8xf32>
    %117 = vector.multi_reduction <add>, %116, %cst_52 [1] : vector<8x32xf32> to vector<8xf32>
    %118 = vector.shape_cast %117 : vector<8xf32> to vector<8x1xf32>
    %cst_53 = arith.constant 3.200000e+01 : f32
    %119 = vector.broadcast %cst_53 : f32 to vector<8x1xf32>
    %120 = arith.divf %118, %119 : vector<8x1xf32>
    %121 = vector.broadcast %120 : vector<8x1xf32> to vector<8x32xf32>
    %122 = arith.subf %116, %121 : vector<8x32xf32>
    %123 = arith.mulf %122, %122 : vector<8x32xf32>
    %cst_54 = arith.constant dense<0.000000e+00> : vector<8xf32>
    %124 = vector.multi_reduction <add>, %123, %cst_54 [1] : vector<8x32xf32> to vector<8xf32>
    %125 = vector.shape_cast %124 : vector<8xf32> to vector<8x1xf32>
    %cst_55 = arith.constant 3.200000e+01 : f32
    %126 = vector.broadcast %cst_55 : f32 to vector<8x1xf32>
    %127 = arith.divf %125, %126 : vector<8x1xf32>
    %128 = vector.broadcast %120 : vector<8x1xf32> to vector<8x32xf32>
    %129 = arith.subf %116, %128 : vector<8x32xf32>
    %cst_56 = arith.constant 9.99999974E-6 : f32
    %130 = vector.broadcast %cst_56 : f32 to vector<8x1xf32>
    %131 = arith.addf %127, %130 : vector<8x1xf32>
    %132 = math.rsqrt %131 : vector<8x1xf32>
    %133 = vector.broadcast %132 : vector<8x1xf32> to vector<8x32xf32>
    %134 = arith.mulf %129, %133 : vector<8x32xf32>
    %c0_57 = arith.constant 0 : index
    %c0_58 = arith.constant 0 : index
    %135 = vector.load %arg12[%c0_57, %c0_58] : memref<1x32xf32, #tpu.memory_space<vmem>>, vector<1x32xf32>
    %136 = vector.broadcast %135 : vector<1x32xf32> to vector<8x32xf32>
    %137 = arith.mulf %134, %136 : vector<8x32xf32>
    %c0_59 = arith.constant 0 : index
    %c0_60 = arith.constant 0 : index
    %138 = vector.load %arg13[%c0_59, %c0_60] : memref<1x32xf32, #tpu.memory_space<vmem>>, vector<1x32xf32>
    %139 = vector.broadcast %138 : vector<1x32xf32> to vector<8x32xf32>
    %140 = arith.addf %137, %139 : vector<8x32xf32>
    %c0_61 = arith.constant 0 : index
    %c0_62 = arith.constant 0 : index
    %c0_63 = arith.constant 0 : index
    %141 = vector.load %arg14[%c0_61, %c0_62, %c0_63] : memref<1x8x32xf32, #tpu.memory_space<vmem>>, vector<1x8x32xf32>
    %142 = vector.shape_cast %141 : vector<1x8x32xf32> to vector<8x32xf32>
    %143 = vector.shape_cast %140 : vector<8x32xf32> to vector<1x8x32xf32>
    tpu.vector_store %arg14[%c0_61, %c0_62, %c0_63], %143 {strides = array<i32>} : memref<1x8x32xf32, #tpu.memory_space<vmem>>, vector<1x8x32xf32>,
    return
  }
  func.func @transform_0(%arg0: i32) -> (i32, i32, i32) {
    %c0_i32 = arith.constant 0 : i32
    %c0_i32_0 = arith.constant 0 : i32
    %c0_i32_1 = arith.constant 0 : i32
    return %arg0, %c0_i32, %c0_i32_0 : i32, i32, i32
  }
  func.func @transform_1(%arg0: i32) -> (i32, i32) {
    %c0_i32 = arith.constant 0 : i32
    %c0_i32_0 = arith.constant 0 : i32
    %c0_i32_1 = arith.constant 0 : i32
    return %c0_i32, %c0_i32_0 : i32, i32
  }
  func.func @transform_2(%arg0: i32) -> (i32, i32) {
    %c0_i32 = arith.constant 0 : i32
    %c0_i32_0 = arith.constant 0 : i32
    %c0_i32_1 = arith.constant 0 : i32
    return %c0_i32, %c0_i32_0 : i32, i32
  }
  func.func @transform_3(%arg0: i32) -> (i32, i32) {
    %c0_i32 = arith.constant 0 : i32
    %c0_i32_0 = arith.constant 0 : i32
    %c0_i32_1 = arith.constant 0 : i32
    return %c0_i32, %c0_i32_0 : i32, i32
  }
  func.func @transform_4(%arg0: i32) -> (i32, i32) {
    %c0_i32 = arith.constant 0 : i32
    %c0_i32_0 = arith.constant 0 : i32
    %c0_i32_1 = arith.constant 0 : i32
    return %c0_i32, %c0_i32_0 : i32, i32
  }
  func.func @transform_5(%arg0: i32) -> (i32, i32) {
    %c0_i32 = arith.constant 0 : i32
    %c0_i32_0 = arith.constant 0 : i32
    %c0_i32_1 = arith.constant 0 : i32
    return %c0_i32, %c0_i32_0 : i32, i32
  }
  func.func @transform_6(%arg0: i32) -> (i32, i32) {
    %c0_i32 = arith.constant 0 : i32
    %c0_i32_0 = arith.constant 0 : i32
    %c0_i32_1 = arith.constant 0 : i32
    return %c0_i32, %c0_i32_0 : i32, i32
  }
  func.func @transform_7(%arg0: i32) -> (i32, i32) {
    %c0_i32 = arith.constant 0 : i32
    %c0_i32_0 = arith.constant 0 : i32
    %c0_i32_1 = arith.constant 0 : i32
    return %c0_i32, %c0_i32_0 : i32, i32
  }
  func.func @transform_8(%arg0: i32) -> (i32, i32) {
    %c0_i32 = arith.constant 0 : i32
    %c0_i32_0 = arith.constant 0 : i32
    %c0_i32_1 = arith.constant 0 : i32
    return %c0_i32, %c0_i32_0 : i32, i32
  }
  func.func @transform_9(%arg0: i32) -> (i32, i32) {
    %c0_i32 = arith.constant 0 : i32
    %c0_i32_0 = arith.constant 0 : i32
    %c0_i32_1 = arith.constant 0 : i32
    return %c0_i32, %c0_i32_0 : i32, i32
  }
  func.func @transform_10(%arg0: i32) -> (i32, i32) {
    %c0_i32 = arith.constant 0 : i32
    %c0_i32_0 = arith.constant 0 : i32
    %c0_i32_1 = arith.constant 0 : i32
    return %c0_i32, %c0_i32_0 : i32, i32
  }
  func.func @transform_11(%arg0: i32) -> (i32, i32) {
    %c0_i32 = arith.constant 0 : i32
    %c0_i32_0 = arith.constant 0 : i32
    %c0_i32_1 = arith.constant 0 : i32
    return %c0_i32, %c0_i32_0 : i32, i32
  }
  func.func @transform_12(%arg0: i32) -> (i32, i32) {
    %c0_i32 = arith.constant 0 : i32
    %c0_i32_0 = arith.constant 0 : i32
    %c0_i32_1 = arith.constant 0 : i32
    return %c0_i32, %c0_i32_0 : i32, i32
  }
  func.func @transform_13(%arg0: i32) -> (i32, i32, i32) {
    %c0_i32 = arith.constant 0 : i32
    %c0_i32_0 = arith.constant 0 : i32
    %c0_i32_1 = arith.constant 0 : i32
    return %arg0, %c0_i32, %c0_i32_0 : i32, i32, i32
  }
}

</mosaic_0001>

<bundles_post_ra>
// kernel: transformer_encoder_layer.1
= control target key start
LH: loop header
LB: loop body
LE: loop exit
PB: predicated region body
PF: predicated region fallthrough
CT: control target
= control target key end

     0   :  { %s2294_s0 = inlined_call_operand.vmem [shape: f32[2,8,32], index: 0, kind: input, shape index: {}]   ;;  %s2295_s1 = inlined_call_operand.vmem [shape: f32[32,96], index: 1, kind: input, shape index: {}]   ;;  %s2296_s2 = inlined_call_operand.vmem [shape: f32[1,96], index: 2, kind: input, shape index: {}]   ;;  %s2297_s3 = inlined_call_operand.vmem [shape: f32[32,32], index: 3, kind: input, shape index: {}]   ;;  %s2298_s4 = inlined_call_operand.vmem [shape: f32[1,32], index: 4, kind: input, shape index: {}]   ;;  %s2299_s5 = inlined_call_operand.vmem [shape: f32[1,32], index: 5, kind: input, shape index: {}]   ;;  %s2300_s6 = inlined_call_operand.vmem [shape: f32[1,32], index: 6, kind: input, shape index: {}]   ;;  %s2301_s7 = inlined_call_operand.vmem [shape: f32[32,64], index: 7, kind: input, shape index: {}]   ;;  %s2302_s8 = inlined_call_operand.vmem [shape: f32[1,64], index: 8, kind: input, shape index: {}]   ;;  %s2303_s9 = inlined_call_operand.vmem [shape: f32[64,32], index: 9, kind: input, shape index: {}]   ;;  %s2304_s10 = inlined_call_operand.vmem [shape: f32[1,32], index: 10, kind: input, shape index: {}]   ;;  %s2305_s11 = inlined_call_operand.vmem [shape: f32[1,32], index: 11, kind: input, shape index: {}]   ;;  %s2306_s12 = inlined_call_operand.vmem [shape: f32[1,32], index: 12, kind: input, shape index: {}]   ;;  %s2307_s13 = inlined_call_operand.hbm [shape: f32[2,8,32], index: 13, kind: output, shape index: {}]  }
   0x1   :  { %2308 = sst [smem:[#allocation5_spill]] %s2294_s0 }
   0x2   :  { %2309 = sst [smem:[#allocation6_spill]] %s2295_s1 }
   0x3   :  { %2310 = sst [smem:[#allocation7_spill]] %s2296_s2 }
   0x4   :  { %2311 = sst [smem:[#allocation8_spill]] %s2297_s3 }
   0x5   :  { %18 = vsyncpa [#allocation3], 0 }
   0x6   :  { %20 = vsyncpa [#allocation3 + $0x1], 0  ;;  %s2021_s25 = smov 0   ;;  %s2023_s26 = smov 0  }
   0x7   :  { %s2025_s27 = smov 0   ;;  %s2027_s28 = smov 0  }
   0x8 LB: > { %s2042_s29 = sadd.s32 4294967295, %s1931_s28   ;;  %s1597_s30 = sadd.s32 4294967294, %s1931_s28   ;;  %s1931_s28 = sphi %s2027_s28, %s2321_s28   ;;  %s1927_s27 = sphi %s2025_s27, %s2320_s27   ;;  %s1923_s26 = sphi %s2023_s26, %s2319_s26   ;;  %s1919_s25 = sphi %s2021_s25, %s2318_s25  }
   0x9   : > { %s2046_s14 = sadd.s32 1, %s1931_s28   ;;  %s311_s15 = sadd.s32 1, %s1927_s27 }
   0xa   : > { %s308_s16 = ssub.s32 %s1931_s28, %s2046_s14  ;;  %p321_p0 = scmp.ne.s32.totalorder %s1927_s27, %s1923_s26 }
   0xb   : > { %p309_p1 = scmp.eq.s32.totalorder %s308_s16, 0  ;;  %p322_p2 = scmp.eq.s32.totalorder %s2042_s29, 1 }
   0xc   : > { %p327_p3 = scmp.ne.s32.totalorder %s1923_s26, %s1919_s25  ;;  %p328_p4 = scmp.eq.s32.totalorder %s1597_s30, 1 }
   0xd   : > { %s2057_s17 = scalar_select %p309_p1, %s1927_s27, %s311_s15  }
   0xe   : > { %p2059_p5 = por %p322_p2, %p321_p0  ;;  %p2063_p6 = por %p328_p4, %p327_p3 }
   0xf   : > { %p1600_p7 = scmp.ge.s32.totalorder %s1931_s28, 1  ;;  %p389_p8 = scmp.lt.s32.totalorder %s1931_s28, 3 }
  0x11   : > { %p390_p9 = pnand %p1600_p7, %p389_p8 }
  0x12   : > { %s2314_s1 = sld [smem:[#allocation6_spill]] (!%p390_p9)  ;;  %v1933_v3 = vmov (!%p390_p9), 0.0|0.0   ;;  %vm1934_vm0 = vmmov (!%p390_p9), 0   ;;  %v1935_v6 = vmov (!%p390_p9), 0.0   ;;  %p432_p10 = scmp.lt.s32.totalorder (!%p390_p9), %s2042_s29, 1  ;;  %vm448_vm1 = vcmask (!%p390_p9), 261120  }
  0x13   : > { %393 = sbr.rel (%p390_p9) target bundleno = 2569 (0xa09), region = 72  ;;  %1763 = vmatprep.subr.bf16.mxu1 (!%p390_p9), %v1933_v3  ;;  %1679 = vmatprep.mubr.msk.f32.mxu1 (!%p390_p9), %vm1934_vm0, %v1935_v6  ;;  %s2315_s0 = sld [smem:[#allocation5_spill]] (!%p390_p9)  ;;  %vm525_vm2 = vcmask (!%p390_p9), 64512   ;;  %vm1199_vm3 = vcmask (!%p390_p9), 130048   ;;  %vm1201_vm4 = vcmask (!%p390_p9), 195584   ;;  %vm1418_vm5 = vcmask (!%p390_p9), 523264  }
  0x14   : > { %1692 = vmatprep.subr.mxu0 (!%p390_p9), %v1935_v6  ;;  %1694 = vmatprep.mubr.msk.f32.mxu0 (!%p390_p9), %vm1934_vm0, %v1935_v6  ;;  %s2316_s2 = sld [smem:[#allocation7_spill]] (!%p390_p9)  ;;  %s1936_s16 = smov (!%p390_p9), 120  }
  0x15   : > { %s1939_s22 = smov (!%p390_p9), 88   ;;  %s1940_s23 = smov (!%p390_p9), 72  }
  0x16   : > { %s1942_s30 = smov (!%p390_p9), 104   ;;  %s1943_s15 = smov (!%p390_p9), 56  }
  0x17   : > { %s2317_s3 = sld [smem:[#allocation8_spill]] (!%p390_p9) }
  0x18   : > { %v437_v0 = vld [vmem:[%s2314_s1] sm:$0xff] (!%p390_p9)  ;;  %v438_v1 = vld [vmem:[%s2314_s1 + $0x8] sm:$0xff] (!%p390_p9)  ;;  %v439_v2 = vld [vmem:[%s2314_s1 + $0x10] sm:$0xff] (!%p390_p9) }
  0x19   : > { %v1764_v4 = vpack.c.bf16 (!%p390_p9), %v438_v1, %v437_v0  ;;  %v440_v5 = vld [vmem:[%s2314_s1 + $0x18] sm:$0xff] (!%p390_p9) }
  0x1a   : > { %v1767_v7 = vpack.c.bf16 %v440_v5, %v439_v2  ;;  %s433_s20 = scalar_select %p432_p10, %s2042_s29, 1  ;;  %v1603_v9 = vld [vmem:[%s2316_s2] ss:$0 sm:$0xff] }
  0x1b   : > { %1765 = vmatpush3.bf16.msra.mxu1 %v1764_v4 }
  0x1c   : > { %1766 = vmatprep.subr.bf16.mxu1 %v1933_v3  ;;  %s1602_s21 = sshll.u32 %s433_s20, 3  ;;  %s1937_s20 = smov 96  }
  0x1d   : > { %s435_s24 = scalar_lea.vmem %s2315_s0, %s1602_s21  ;;  %s1938_s21 = smov 80  }
  0x1e   : > { %v2093_v8 = vld [vmem:[%s435_s24] sm:$0xff]  ;;  %s1941_s24 = smov 112  }
  0x1f   : > { %1768 = vmatpush3.bf16.msra.mxu1 %v1767_v7 }
  0x20   : > { %1682 = vmatprep.subr.mxu1 %v1935_v6 }
  0x22   : > { %1680 = vmatmul.mubr.msk.f32.vlgmr.msra.gmra.mrb[0].mxu1 %vm448_vm1, %v2093_v8 }
  0x23   : > { %1684 = vmatprep.mubr.msk.f32.mxu1 %vm1934_vm0, %v1935_v6 }
  0xf5   : > { %v518_v10 = vpop.f32.mrb[0].mxu1 }
  0xf6   : > { %v2103_v11 = vadd.f32 %v1603_v9, %v518_v10  ;;  %v1681_v12 = vpop.f32.mrb[1].mxu1 }
  0xf7   : > { %v1204_v12 = vld [vmem:[%s2317_s3 + $0x8] sm:$0xff] }
  0xf8   : > { %688 = vrot.lane.b32.xlu1 %v2103_v11, %s1936_s16  ;;  %523 = vrot.lane.b32.xlu0 %v2103_v11, %s1937_s20  ;;  %s1944_s16 = smov 64   ;;  %s1945_s20 = smov 48  }
  0xfc   : > { %856 = vrot.lane.b32.xlu1 %v2103_v11, %s1938_s21  ;;  %690 = vrot.lane.b32.xlu0 %v2103_v11, %s1939_s22  ;;  %s1946_s21 = smov 40  }
 0x100   : > { %1022 = vrot.lane.b32.xlu1 %v2103_v11, %s1940_s23  ;;  %854 = vrot.lane.b32.xlu0 %v2103_v11, %s1941_s24  ;;  %s1948_s23 = smov 16   ;;  %s1949_s24 = smov 24  }
 0x104   : > { %1020 = vrot.lane.b32.xlu0 %v2103_v11, %s1942_s30 }
 0x16a   : > { %v689_v13 = vpop.permute.xlu1 %688  ;;  %v524_v14 = vpop.permute.xlu0 %523 }
 0x16b   : > { %1683 = vmatpush3.xpose.msk.msra.mxu1 %vm525_vm2, %v524_v14 }
 0x16c   : > { %1687 = vmatprep.subr.mxu1 %v1935_v6 }
 0x16e   : > { %1685 = vmatmul.mubr.msk.f32.vlgmr.msra.gmra.mrb[2].mxu1 %vm525_vm2, %v2103_v11  ;;  %v691_v15 = vpop.permute.xlu0 %690  ;;  %v857_v16 = vpop.permute.xlu1 %856 }
 0x16f   : > { %1693 = vmatpush3.xpose.msk.msra.mxu0 %vm525_vm2, %v691_v15  ;;  %1689 = vmatprep.mubr.msk.f32.mxu1 %vm1934_vm0, %v1935_v6 }
 0x170   : > { %1702 = vmatprep.subr.mxu0 %v1935_v6 }
 0x172   : > { %1695 = vmatmul.mubr.msk.f32.vlgmr.msra.gmra.mrb[0].mxu0 %vm525_vm2, %v689_v13  ;;  %v855_v17 = vpop.permute.xlu0 %854  ;;  %v1023_v18 = vpop.permute.xlu1 %1022 }
 0x173   : > { %1703 = vmatpush3.xpose.msk.msra.mxu0 %vm525_vm2, %v857_v16  ;;  %1704 = vmatprep.mubr.msk.f32.mxu0 %vm1934_vm0, %v1935_v6 }
 0x174   : > { %1712 = vmatprep.subr.mxu0 %v1935_v6 }
 0x176   : > { %1705 = vmatmul.mubr.msk.f32.vlgmr.msra.gmra.mrb[2].mxu0 %vm525_vm2, %v855_v17  ;;  %v1021_v19 = vpop.permute.xlu0 %1020 }
 0x177   : > { %1713 = vmatpush3.xpose.msk.msra.mxu0 %vm525_vm2, %v1023_v18  ;;  %1714 = vmatprep.mubr.msk.f32.mxu0 %vm1934_vm0, %v1935_v6  ;;  %v1205_v18 = vld [vmem:[%s2317_s3 + $0x10] sm:$0xff] }
 0x178   : > { %1769 = vmatprep.subr.bf16.mxu0 %v1933_v3 }
 0x17a   : > { %1715 = vmatmul.mubr.msk.f32.vlgmr.msra.gmra.mrb[4].mxu0 %vm525_vm2, %v1021_v19  ;;  %v1206_v19 = vld [vmem:[%s2317_s3 + $0x18] sm:$0xff] }
 0x17b   : > { %1730 = vmatprep.mubr.msk.f32.mxu0 %vm1934_vm0, %v1935_v6 }
 0x241   : > { %v596_v20 = vpop.f32.mrb[2].mxu1 }
 0x242   : > { %v600_v21 = vmul.f32 0.17677669, %v596_v20  ;;  %v1686_v22 = vpop.f32.mrb[3].mxu1  ;;  %v1773_v20 = vpack.c.bf16 %v1206_v19, %v1205_v18 }
 0x244   : > { %v601_v23 = vsel %vm525_vm2, %v600_v21, -inf }
 0x245   : > { %v762_v24 = vpop.f32.mrb[0].mxu0  ;;  %602 = vmax.xlane.f32.xlu1 %v601_v23 }
 0x246   : > { %v766_v25 = vmul.f32 0.17677669, %v762_v24  ;;  %v1696_v26 = vpop.f32.mrb[1].mxu0 }
 0x248   : > { %v767_v27 = vsel %vm525_vm2, %v766_v25, -inf }
 0x249   : > { %768 = vmax.xlane.f32.xlu0 %v767_v27  ;;  %v928_v28 = vpop.f32.mrb[2].mxu0 }
 0x24a   : > { %v932_v29 = vmul.f32 0.17677669, %v928_v28  ;;  %v1706_v30 = vpop.f32.mrb[3].mxu0 }
 0x24c   : > { %v933_v31 = vsel %vm525_vm2, %v932_v29, -inf }
 0x24d   : > { %934 = vmax.xlane.f32.xlu0 %v933_v31  ;;  %v1094_v32 = vpop.f32.mrb[4].mxu0  ;;  %v1617_v31 = vld [vmem:[%s2298_s4] ss:$0 sm:$0xff] }
 0x24e   : > { %v1098_v33 = vmul.f32 0.17677669, %v1094_v32  ;;  %v1716_v34 = vpop.f32.mrb[5].mxu0 }
 0x250   : > { %v1099_v35 = vsel %vm525_vm2, %v1098_v33, -inf }
 0x251   : > { %1100 = vmax.xlane.f32.xlu1 %v1099_v35 }
 0x262   : > { %778 = vrot.lane.b32.xlu1 %v2103_v11, %s1943_s15  ;;  %s1947_s15 = smov 8  }
 0x2d2   : > { %v603_v36 = vpop.xlane.xlu1 %602 }
 0x2d3   : > { %v604_v37 = vsub.f32 %v600_v21, %v603_v36 }
 0x2d5   : > { %v605_v38 = vmul.f32 1.442695, %v604_v37 }
 0x2d6   : > { %v769_v39 = vpop.xlane.xlu0 %768 }
 0x2d7   : > { %1849 = vpow2.f32 %v605_v38  ;;  %v770_v40 = vsub.f32 %v766_v25, %v769_v39 }
 0x2d9   : > { %v771_v41 = vmul.f32 1.442695, %v770_v40 }
 0x2da   : > { %v935_v51 = vpop.xlane.xlu0 %934 }
 0x2db   : > { %1851 = vpow2.f32 %v771_v41  ;;  %v936_v52 = vsub.f32 %v932_v29, %v935_v51 }
 0x2dd   : > { %v937_v53 = vmul.f32 1.442695, %v936_v52  ;;  %v1407_v52 = vld [vmem:[%s2303_s9 + $0x20] sm:$0xff] }
 0x2de   : > { %v1101_v42 = vpop.xlane.xlu1 %1100 }
 0x2df   : > { %v1102_v43 = vsub.f32 %v1098_v33, %v1101_v42  ;;  %v1319_v42 = vld [vmem:[%s2301_s7 + $0x8] sm:$0xff] }
 0x2e1   : > { %v1850_v44 = vpop.eup %1849  ;;  %v1103_v45 = vmul.f32 1.442695, %v1102_v43 }
 0x2e2   : > { %v607_v46 = vsel %vm525_vm2, %v1850_v44, 0.0  ;;  %v779_v56 = vpop.permute.xlu1 %778 }
 0x2e3   : > { %1853 = vpow2.f32 %v1103_v45  ;;  %608 = vadd.xlane.f32.xlu0 %v607_v46  ;;  %v1403_v46 = vld [vmem:[%s2303_s9] sm:$0xff] }
 0x2e4   : > { %1855 = vpow2.f32 %v937_v53  ;;  %v1408_v53 = vld [vmem:[%s2303_s9 + $0x28] sm:$0xff] }
 0x2e5   : > { %v1852_v47 = vpop.eup %1851 }
 0x2e6   : > { %v773_v48 = vsel %vm525_vm2, %v1852_v47, 0.0 }
 0x2e7   : > { %774 = vadd.xlane.f32.xlu1 %v773_v48  ;;  %v1405_v48 = vld [vmem:[%s2303_s9 + $0x10] sm:$0xff] }
 0x2ed   : > { %v1854_v49 = vpop.eup %1853 }
 0x2ee   : > { %v1105_v50 = vsel %vm525_vm2, %v1854_v49, 0.0  ;;  %v1856_v54 = vpop.eup %1855 }
 0x2ef   : > { %1106 = vadd.xlane.f32.xlu1 %v1105_v50  ;;  %v939_v55 = vsel %vm525_vm2, %v1856_v54, 0.0  ;;  %v1406_v50 = vld [vmem:[%s2303_s9 + $0x18] sm:$0xff] }
 0x2f0   : > { %v1785_v51 = vpack.c.bf16 %v1406_v50, %v1405_v48 }
 0x2f9   : > { %612 = vrot.lane.b32.xlu0 %v2103_v11, %s1944_s16  ;;  %s1628_s16 = sshll.u32 %s2042_s29, 7  ;;  %s1950_s29 = smov [#allocation2]  }
 0x300   : > { %944 = vrot.lane.b32.xlu1 %v2103_v11, %s1945_s20 }
 0x318   : > { %940 = vadd.xlane.f32.xlu0 %v939_v55 }
 0x32e   : > { %1110 = vrot.lane.b32.xlu0 %v2103_v11, %s1946_s21  ;;  %v1203_v11 = vld [vmem:[%s2317_s3] sm:$0xff]  ;;  %s429_s21 = sand.u32 1, %s1923_s26   ;;  %s2251_s3 = scalar_lea.hbm %s2307_s13, %s1628_s16 }
 0x32f   : > { %v1770_v13 = vpack.c.bf16 %v1204_v12, %v1203_v11  ;;  %s1601_s22 = sshll.u32 %s429_s21, 3 }
 0x330   : > { %s431_s20 = scalar_lea.vmem [#allocation2], %s1601_s22  ;;  %s1873_s22 = sshll.u32 %s1950_s29, 4  ;;  %s1874_s22 = int_to_ptr.vmem [resolvable:$false] %s1873_s22 }
 0x331   : > { %1771 = vmatpush3.bf16.msra.mxu0 %v1770_v13  ;;  %s1538_s0 = sshll.u32 %s431_s20, 4  ;;  %s1875_s30 = scalar_lea.vmem %s1874_s22, 256  ;;  %s2253_s0 = int_to_ptr.vmem [resolvable:$true] %s1538_s0 }
 0x332   : > { %1772 = vmatprep.subr.bf16.mxu0 %v1933_v3  ;;  %p1876_p0 = scmp.lt.s32.totalorder %s2253_s0, %s1874_s22 }
 0x335   : > { %1774 = vmatpush3.bf16.msra.mxu0 %v1773_v20 }
 0x336   : > { %1781 = vmatprep.subr.bf16.mxu0 %v1933_v3 }
 0x370   : > { %v609_v57 = vpop.xlane.xlu0 %608 }
 0x371   : > { %1857 = vrcp.f32 %v609_v57 }
 0x374   : > { %v613_v58 = vpop.permute.xlu0 %612  ;;  %v775_v59 = vpop.xlane.xlu1 %774 }
 0x375   : > { %1859 = vrcp.f32 %v775_v59  ;;  %1688 = vmatpush3.msra.mxu1 %v613_v58  ;;  %v1619_v59 = vld [vmem:[%s2299_s5] ss:$0 sm:$0xff] }
 0x376   : > { %1697 = vmatprep.subr.mxu1 %v1935_v6 }
 0x37b   : > { %v1858_v60 = vpop.eup %1857 }
 0x37c   : > { %v611_v61 = vmul.f32 %v1858_v60, %v1850_v44  ;;  %v1107_v62 = vpop.xlane.xlu1 %1106  ;;  %v1321_v44 = vld [vmem:[%s2301_s7 + $0x18] sm:$0xff] }
 0x37e   : > { %1690 = vmatmul.mubr.msk.f32.vlgmr.msra.gmra.mrb[4].mxu1 %vm525_vm2, %v611_v61  ;;  %v1620_v61 = vld [vmem:[%s2300_s6] ss:$0 sm:$0xff] }
 0x37f   : > { %v1860_v63 = vpop.eup %1859  ;;  %1698 = vmatpush3.msra.mxu1 %v779_v56  ;;  %1699 = vmatprep.mubr.msk.f32.mxu1 %vm1934_vm0, %v1935_v6 }
 0x380   : > { %v777_v0 = vmul.f32 %v1860_v63, %v1852_v47  ;;  %v945_v1 = vpop.permute.xlu1 %944  ;;  %1707 = vmatprep.subr.mxu1 %v1935_v6  ;;  %v1404_v47 = vld [vmem:[%s2303_s9 + $0x8] sm:$0xff] }
 0x382   : > { %1700 = vmatmul.mubr.msk.f32.vlgmr.msra.gmra.mrb[6].mxu1 %vm525_vm2, %v777_v0  ;;  %v1410_v0 = vld [vmem:[%s2303_s9 + $0x38] sm:$0xff] }
 0x383   : > { %1708 = vmatpush3.msra.mxu1 %v945_v1  ;;  %1709 = vmatprep.mubr.msk.f32.mxu1 %vm1934_vm0, %v1935_v6 }
 0x384   : > { %1717 = vmatprep.subr.mxu1 %v1935_v6 }
 0x3a5   : > { %v941_v2 = vpop.xlane.xlu0 %940 }
 0x3a6   : > { %1861 = vrcp.f32 %v941_v2  ;;  %v1621_v2 = vld [vmem:[%s2302_s8] ss:$0 sm:$0xff] }
 0x3a7   : > { %1863 = vrcp.f32 %v1107_v62 }
 0x3a9   : > { %v1111_v9 = vpop.permute.xlu0 %1110 }
 0x3b0   : > { %v1862_v4 = vpop.eup %1861 }
 0x3b1   : > { %v943_v5 = vmul.f32 %v1862_v4, %v1856_v54  ;;  %v1864_v7 = vpop.eup %1863  ;;  %v1788_v54 = vpack.c.bf16 %v1408_v53, %v1407_v52 }
 0x3b2   : > { %v1109_v10 = vmul.f32 %v1864_v7, %v1854_v49  ;;  %v1782_v49 = vpack.c.bf16 %v1404_v47, %v1403_v46 }
 0x3b3   : > { %1710 = vmatmul.mubr.msk.f32.vlgmr.msra.gmra.mrb[8].mxu1 %vm525_vm2, %v943_v5 }
 0x3b4   : > { %1718 = vmatpush3.msra.mxu1 %v1111_v9  ;;  %1719 = vmatprep.mubr.msk.f32.mxu1 %vm1934_vm0, %v1935_v6 }
 0x3b5   : > { %1775 = vmatprep.subr.bf16.mxu1 %v1933_v3 }
 0x3b7   : > { %1720 = vmatmul.mubr.msk.f32.vlgmr.msra.gmra.mrb[10].mxu1 %vm525_vm2, %v1109_v10  ;;  %v1623_v10 = vld [vmem:[%s2304_s10] ss:$0 sm:$0xff] }
 0x3b8   : > { %1741 = vmatprep.mubr.msk.f32.mxu1 %vm1934_vm0, %v1935_v6 }
 0x451   : > { %v684_v14 = vpop.f32.mrb[4].mxu1 }
 0x452   : > { %v1691_v15 = vpop.f32.mrb[5].mxu1 }
 0x455   : > { %v850_v16 = vpop.f32.mrb[6].mxu1 }
 0x456   : > { %1187 = vrot.lane.b32.xlu1 %v850_v16, %s1947_s15  ;;  %v1701_v17 = vpop.f32.mrb[7].mxu1 }
 0x486   : > { %v1016_v21 = vpop.f32.mrb[8].mxu1 }
 0x487   : > { %1191 = vrot.lane.b32.xlu0 %v1016_v21, %s1948_s23  ;;  %v1711_v22 = vpop.f32.mrb[9].mxu1  ;;  %s1525_s23 = scalar_lea.sflag [#allocation3], %s429_s21 }
 0x48a   : > { %v1182_v23 = vpop.f32.mrb[10].mxu1 }
 0x48b   : > { %1195 = vrot.lane.b32.xlu1 %v1182_v23, %s1949_s24  ;;  %v1721_v24 = vpop.f32.mrb[11].mxu1  ;;  %s1869_s24 = scalar_lea.vmem %s2253_s0, 128 }
 0x48c   : > { %p1870_p11 = scmp.ne.s32.totalorder %s2253_s0, %s1869_s24  ;;  %p1877_p1 = scmp.lt.s32.totalorder %s1875_s30, %s1869_s24 }
 0x48e   : > { %p1871_p12 = pnand %p1870_p11, %p2059_p5  ;;  %p1878_p2 = por %p1877_p1, %p1876_p0 }
 0x490   : > { %p1872_p13 = pneg %p1871_p12 }
 0x492   : > { %p1879_p3 = pnand %p1878_p2, %p1872_p13 }
 0x4c8   : > { %v1188_v25 = vpop.permute.xlu1 %1187 }
 0x4c9   : > { %v1198_v27 = vsel %vm525_vm2, %v684_v14, %v1188_v25 }
 0x4f9   : > { %v1192_v26 = vpop.permute.xlu0 %1191 }
 0x4fa   : > { %v1200_v28 = vsel %vm1199_vm3, %v1198_v27, %v1192_v26  ;;  %v1625_v26 = vld [vmem:[%s2305_s11] ss:$0 sm:$0xff] }
 0x4fd   : > { %v1196_v29 = vpop.permute.xlu1 %1195 }
 0x4fe   : > { %v1202_v30 = vsel %vm1201_vm4, %v1200_v28, %v1196_v29  ;;  %v1626_v28 = vld [vmem:[%s2306_s12] ss:$0 sm:$0xff] }
 0x4ff   : > { %1731 = vmatmul.mubr.msk.f32.vlgmr.msra.gmra.mrb[6].mxu0 %vm448_vm1, %v1202_v30 }
 0x500   : > { %1760 = vmatprep.mubr.msk.f32.mxu0 %vm1934_vm0, %v1935_v6  ;;  %v1318_v6 = vld [vmem:[%s2301_s7] sm:$0xff]  ;;  %1783 = vmatpush3.bf16.msra.mxu0 %v1782_v49 }
 0x501   : > { %v1776_v43 = vpack.c.bf16 %v1319_v42, %v1318_v6  ;;  %1784 = vmatprep.subr.bf16.mxu0 %v1933_v3 }
 0x503   : > { %1777 = vmatpush3.bf16.msra.mxu1 %v1776_v43 }
 0x504   : > { %1778 = vmatprep.subr.bf16.mxu1 %v1933_v3  ;;  %1786 = vmatpush3.bf16.msra.mxu0 %v1785_v51 }
 0x505   : > { %1787 = vmatprep.subr.bf16.mxu0 %v1933_v3 }
 0x508   : > { %1789 = vmatpush3.bf16.msra.mxu0 %v1788_v54 }
 0x509   : > { %1790 = vmatprep.subr.bf16.mxu0 %v1933_v3  ;;  %v1409_v3 = vld [vmem:[%s2303_s9 + $0x30] sm:$0xff] }
 0x50a   : > { %v1791_v1 = vpack.c.bf16 %v1410_v0, %v1409_v3 }
 0x50c   : > { %1792 = vmatpush3.bf16.msra.mxu0 %v1791_v1 }
 0x5d2   : > { %v1283_v32 = vpop.f32.mrb[6].mxu0 }
 0x5d3   : > { %v1284_v33 = vadd.f32 %v1617_v31, %v1283_v32  ;;  %v1732_v34 = vpop.f32.mrb[7].mxu0 }
 0x5d5   : > { %v1287_v35 = vadd.f32 %v1284_v33, %v2093_v8  ;;  %v1320_v8 = vld [vmem:[%s2301_s7 + $0x10] sm:$0xff] }
 0x5d6   : > { %v1779_v45 = vpack.c.bf16 %v1321_v44, %v1320_v8 }
 0x5d7   : > { %v1288_v36 = vsel %vm448_vm1, %v1287_v35, 0.0 }
 0x5d8   : > { %1289 = vadd.xlane.f32.xlu0 %v1288_v36  ;;  %1780 = vmatpush3.bf16.msra.mxu1 %v1779_v45 }
 0x665   : > { %v1290_v37 = vpop.xlane.xlu0 %1289 }
 0x666   : > { %v1292_v38 = vmul.f32 0.03125, %v1290_v37 }
 0x668   : > { %v1293_v39 = vsub.f32 %v1287_v35, %v1292_v38 }
 0x66a   : > { %v1294_v40 = vmul.f32 %v1293_v39, %v1293_v39 }
 0x66c   : > { %v1295_v41 = vsel %vm448_vm1, %v1294_v40, 0.0 }
 0x66d   : > { %1296 = vadd.xlane.f32.xlu1 %v1295_v41 }
 0x6fa   : > { %v1297_v55 = vpop.xlane.xlu1 %1296 }
 0x6fb   : > { %v1298_v56 = vmul.f32 0.03125, %v1297_v55 }
 0x6fd   : > { %v1299_v57 = vadd.f32 1e-05, %v1298_v56 }
 0x6ff   : > { %1865 = vrsqrt.f32 %v1299_v57 }
 0x709   : > { %v1866_v58 = vpop.eup %1865 }
 0x70a   : > { %v1301_v60 = vmul.f32 %v1866_v58, %v1293_v39 }
 0x70c   : > { %v1309_v62 = vmul.f32 %v1619_v59, %v1301_v60 }
 0x70e   : > { %v1317_v63 = vadd.f32 %v1620_v61, %v1309_v62 }
 0x710   : > { %1742 = vmatmul.mubr.msk.f32.vlgmr.msra.gmra.mrb[12].mxu1 %vm448_vm1, %v1317_v63 }
 0x7e3   : > { %v1398_v4 = vpop.f32.mrb[12].mxu1 }
 0x7e4   : > { %v1399_v5 = vadd.f32 %v1621_v2, %v1398_v4  ;;  %v1743_v7 = vpop.f32.mrb[13].mxu1 }
 0x7e6   : > { %v1402_v9 = vmax.f32 %v1399_v5, 0.0 }
 0x7e8   : > { %1761 = vmatmul.mubr.msk.f32.vlgmr.msra.gmra.mrb[8].mxu0 %vm1418_vm5, %v1402_v9 }
 0x8bb   : > { %v1488_v11 = vpop.f32.mrb[8].mxu0 }
 0x8bc   : > { %v1489_v12 = vadd.f32 %v1623_v10, %v1488_v11  ;;  %v1762_v13 = vpop.f32.mrb[9].mxu0 }
 0x8be   : > { %v1492_v14 = vmax.f32 %v1489_v12, 0.0 }
 0x8c0   : > { %v1493_v15 = vadd.f32 %v1492_v14, %v1317_v63 }
 0x8c2   : > { %v1494_v16 = vsel %vm448_vm1, %v1493_v15, 0.0 }
 0x8c3   : > { %1495 = vadd.xlane.f32.xlu0 %v1494_v16 }
 0x950   : > { %v1496_v17 = vpop.xlane.xlu0 %1495 }
 0x951   : > { %v1497_v18 = vmul.f32 0.03125, %v1496_v17 }
 0x953   : > { %v1498_v19 = vsub.f32 %v1493_v15, %v1497_v18 }
 0x955   : > { %v1499_v20 = vmul.f32 %v1498_v19, %v1498_v19 }
 0x957   : > { %v1500_v21 = vsel %vm448_vm1, %v1499_v20, 0.0 }
 0x958   : > { %1501 = vadd.xlane.f32.xlu0 %v1500_v21 }
 0x9e5   : > { %v1502_v22 = vpop.xlane.xlu0 %1501 }
 0x9e6   : > { %v1503_v23 = vmul.f32 0.03125, %v1502_v22 }
 0x9e8   : > { %v1504_v24 = vadd.f32 1e-05, %v1503_v23 }
 0x9ea   : > { %1867 = vrsqrt.f32 %v1504_v24 }
 0x9f4   : > { %v1868_v25 = vpop.eup %1867 }
 0x9f5   : > { %v1506_v27 = vmul.f32 %v1868_v25, %v1498_v19 }
 0x9f7   : > { %v1514_v29 = vmul.f32 %v1625_v26, %v1506_v27 }
 0x9f9   : > { %v1522_v30 = vadd.f32 %v1626_v28, %v1514_v29 }
 0x9fb   : > { %1523 = vst.msk [vmem:[%s431_s20] sm:$0xff] %vm448_vm1, %v1522_v30 }
 0x9fc   : > { %1882 = shalt.err (!%p1879_p3)
}
 0x9fd   : > { %s1883_s2 = scalar_lea.hbm %s2251_s3, 128  ;;  %s1887_s16 = scalar_lea.hbm %s2307_s13, 256 }
 0x9fe   : > { %p1884_p4 = scmp.ne.s32.totalorder %s2251_s3, %s1883_s2  ;;  %p1888_p9 = scmp.lt.u32.totalorder %s2251_s3, %s2307_s13 }
 0x9ff   : > { %p1889_p10 = scmp.lt.u32.totalorder %s1887_s16, %s1883_s2  ;;  %p1891_p12 = scmp.lt.u32.totalorder %s1883_s2, %s2251_s3 }
 0xa00   : > { %p1885_p7 = pnand %p1884_p4, %p2059_p5 }
 0xa01   : > { %p1890_p11 = por %p1889_p10, %p1888_p9 }
 0xa02   : > { %p1886_p8 = pneg %p1885_p7 }
 0xa03   : > { %p1892_p13 = por %p1891_p12, %p1890_p11 }
 0xa05   : > { %p1893_p0 = pnand %p1892_p13, %p1886_p8 }
 0xa07   : > { %1896 = shalt.err (!%p1893_p0)
}
 0xa08   : > { %1793 = dma.vmem_to_hbm [thread:$0]  (%p2059_p5), %s2253_s0, 128, %s2251_s3, %s1525_s23  }
 0xa09 PF: > { %p1799_p1 = scmp.ge.s32.totalorder %s1931_s28, 2  ;;  %s1550_s24 = sand.u32 1, %s1919_s25  }
 0xa0a   : > { %s1551_s29 = scalar_lea.sflag [#allocation3], %s1550_s24 }
 0xa0b   : > { %p1796_p2 = pnand %p1799_p1, %p2063_p6 }
 0xa0d   : > { %1914 = dma.done.wait (!%p1796_p2), %s1551_s29, 128  }
 0xa0e   : > { %1916 = vsyncadd (!%p1796_p2), %s1551_s29, 4294967168  ;;  %p23_p3 = scmp.ge.s32.totalorder %s2046_s14, 4   ;;  %s2318_s25 = smov %s1923_s26 }
 0xa0f   : > { %s2319_s26 = smov %s1927_s27  ;;  %s2320_s27 = smov %s2057_s17 }
 0xa10   : > { %s2321_s28 = smov %s2046_s14  ;;  %25 = sbr.rel (!%p23_p3) target bundleno = 8 (0x8), region = 107 }
 0xa17   :  { %1556 = vsyncpa [#allocation3], 1 }
 0xa18   :  { %1558 = vsyncpa [#allocation3 + $0x1], 1 }

</bundles_post_ra>
